<compile_context>
chip_gen: v7x
topology: tpu7x:2x2x1
jax: 0.10.0
libtpu: 0.0.40
codegen_flags: <defaults>
</compile_context>

<pallas_src>
import functools

import jax
import jax.numpy as jnp
from jax.experimental import pallas as pl
from jax.experimental.pallas import tpu as pltpu

_LANE = 128                     # lane width: hidden feature dims padded to this
_SUBLANE_BF16 = 16              # bf16 sublane granule: batch tiles are multiples of this
_COMPUTE_DTYPE = jnp.bfloat16   # MXU input dtype (accumulation stays f32)


def _round_up(x, m):
    return ((x + m - 1) // m) * m


# -----------------------------------------------------------------------------
# Kernel: fused MLP (all layers in one body)
# -----------------------------------------------------------------------------
def _fused_mlp_kernel(*refs, n_layers):
    """refs = (x_ref, w0, b0, w1, b1, ..., o_ref).

    The entire MLP runs inside one kernel invocation: intermediate activations
    stay as values (vregs/VMEM) and are never written back to HBM.  The last
    layer is unpadded, so the final store is exactly (tb, feature_dim).
    """
    x_ref, o_ref = refs[0], refs[-1]
    wb = refs[1:-1]
    h = x_ref[...]                                    # bf16 [tb, in_dim]
    for i in range(n_layers):
        w_ref = wb[2 * i]                             # bf16 [in(_pad), out(_pad)]
        b_ref = wb[2 * i + 1]                         # f32  [1, out(_pad)]
        y = jnp.dot(h.astype(_COMPUTE_DTYPE), w_ref[...],
                    preferred_element_type=jnp.float32)
        y = y + b_ref[...]                            # f32 epilogue, (1, out) broadcast
        h = jnp.maximum(y, 0.0) if i < n_layers - 1 else jnp.tanh(y)
    o_ref[...] = h.astype(o_ref.dtype)                # narrow, true-width store


def _pick_batch_tile(B, batch_tile):
    """Choose a batch tile: multiple of 16 (bf16 sublanes), never exceeding B,
    and giving >= 2 grid steps when B allows it (v7x megacore)."""
    if B <= 2 * _SUBLANE_BF16:
        return B                                   # single full-extent block (always legal)
    if B <= batch_tile:
        return _round_up(pl.cdiv(B, 2), _SUBLANE_BF16)   # <= B here, >= 2 grid steps
    return batch_tile


def curiosity_forward(packed_params, x, *, batch_tile=512):
    """Forward pass matching CuriosityNetwork.forward: relu on hidden layers,
    tanh on the last.  x: [B, in_dim]; returns [B, feature_dim] f32."""
    n_layers = len(packed_params)
    B, in_dim = x.shape
    feature_dim = packed_params[-1][0].shape[1]    # last layer is NOT padded

    # Halves input DMA bytes (no-op if x is already bf16; typically fuses upstream under jit).
    x_c = x.astype(_COMPUTE_DTYPE)

    tb = _pick_batch_tile(B, batch_tile)
    grid = pl.cdiv(B, tb)                          # ragged last tile handled by Pallas masking

    in_specs = [pl.BlockSpec((tb, in_dim), lambda i: (i, 0))]
    args = [x_c]
    for w_t, b in packed_params:
        # Full-array blocks, constant index_map -> weights stay VMEM-resident
        # across all batch tiles (no per-tile re-DMA).
        in_specs.append(pl.BlockSpec(w_t.shape, lambda i: (0, 0)))
        in_specs.append(pl.BlockSpec(b.shape, lambda i: (0, 0)))
        args += [w_t, b]

    kernel = functools.partial(_fused_mlp_kernel, n_layers=n_layers)
    return pl.pallas_call(
        kernel,
        out_shape=jax.ShapeDtypeStruct((B, feature_dim), jnp.float32),
        grid=(grid,),
        in_specs=in_specs,
        out_specs=pl.BlockSpec((tb, feature_dim), lambda i: (i, 0)),
        compiler_params=pltpu.CompilerParams(
            dimension_semantics=("parallel",),       # v7x: shard batch tiles over both TCs
            vmem_limit_bytes=32 * 1024 * 1024,       # headroom even on v7x (64 MiB physical)
        ),
    )(*args)


# -----------------------------------------------------------------------------
# Parameter construction (matches CuriosityNetwork.__init__ semantics)
# -----------------------------------------------------------------------------
def _orthogonal(key, shape, dtype=jnp.float32):
    """Deterministic orthogonal init matching nn.init.orthogonal_ semantics
    (rows or columns of the [out, in] weight matrix are orthonormal)."""
    rows, cols = shape
    n = max(rows, cols)
    a = jax.random.normal(key, (n, n), dtype=jnp.float32)
    q, r = jnp.linalg.qr(a)
    q = q * jnp.sign(jnp.diag(r))[None, :]
    return q[:rows, :cols].astype(dtype)


def init_curiosity_params(key, layers, target=True):
    """f32 reference parameters: list of (w_t [in, out], b [1, out]).
    target=True -> bias 0, else bias 1 (as in the PyTorch module)."""
    params = []
    bias_val = 0.0 if target else 1.0
    for i, (in_dim, out_dim) in enumerate(zip(layers[:-1], layers[1:])):
        k = jax.random.fold_in(key, i)
        w = _orthogonal(k, (out_dim, in_dim))          # torch layout [out, in]
        params.append((jnp.transpose(w),               # kernel layout [in, out]
                       jnp.full((1, out_dim), bias_val, dtype=jnp.float32)))
    return params


def pack_curiosity_params(params):
    """Pad HIDDEN layers' output dims up to a multiple of 128 (lane-dense matmuls);
    the LAST layer's output dim stays at the true feature_dim so the kernel writes
    only the useful columns.  Weights cast to bf16; biases stay f32."""
    packed = []
    n_layers = len(params)
    prev_out_pad = params[0][0].shape[0]   # first-layer input dim (unpadded)
    for li, (w_t, b) in enumerate(params):
        in_dim, out_dim = w_t.shape
        is_last = li == n_layers - 1
        out_pad = out_dim if is_last else _round_up(out_dim, _LANE)
        w_p = jnp.zeros((prev_out_pad, out_pad), jnp.float32)
        w_p = w_p.at[:in_dim, :out_dim].set(w_t)
        b_p = jnp.zeros((1, out_pad), jnp.float32).at[:, :out_dim].set(b)
        packed.append((w_p.astype(_COMPUTE_DTYPE), b_p))
        prev_out_pad = out_pad
    return packed


# -----------------------------------------------------------------------------
# Demo + sanity check
# -----------------------------------------------------------------------------
if __name__ == "__main__":
    key = jax.random.PRNGKey(0)
    layers = [32, 64, 64, 16]   # layers[0] = input dim, layers[-1] = feature dim
    batch = 8

    params = init_curiosity_params(jax.random.fold_in(key, 1), layers, target=True)
    packed = pack_curiosity_params(params)
    x = jax.random.normal(jax.random.fold_in(key, 2), (batch, layers[0]),
                          dtype=jnp.float32)

    out = curiosity_forward(packed, x)
    jax.block_until_ready(out)

    # pure-JAX references
    def ref_fwd(ps, xv, cast=None):
        h = xv
        for i, (w_t, b) in enumerate(ps):
            if cast is None:
                y = h @ w_t + b
            else:
                y = jnp.dot(h.astype(cast), w_t.astype(cast),
                            preferred_element_type=jnp.float32) + b
            h = jnp.maximum(y, 0.0) if i < len(ps) - 1 else jnp.tanh(y)
        return h

    ref_f32 = ref_fwd(params, x)
    ref_bf16 = ref_fwd(params, x.astype(jnp.bfloat16), cast=jnp.bfloat16)

    assert out.shape == (batch, layers[-1])
    assert jnp.allclose(out, ref_bf16, atol=2e-3), "mismatch vs bf16-mirrored reference"
    assert jnp.allclose(out, ref_f32, atol=5e-2), "mismatch vs f32 reference"

    # Also exercise a batch that takes the multi-tile (ragged last tile) path.
    xb = jax.random.normal(jax.random.fold_in(key, 3), (100, layers[0]), jnp.float32)
    out_b = curiosity_forward(packed, xb)
    jax.block_until_ready(out_b)
    assert out_b.shape == (100, layers[-1])
    assert jnp.allclose(out_b, ref_fwd(params, xb), atol=5e-2), "multi-tile mismatch"

    print("KERNEL_OK")
</pallas_src>

<mosaic_0001>
module attributes {stable_mosaic.version = 11 : i64} {
  func.func @_fused_mlp_kernel(%arg0: i32, %arg1: memref<8x32xbf16, #tpu.memory_space<vmem>>, %arg2: memref<32x128xbf16, #tpu.memory_space<vmem>>, %arg3: memref<1x128xf32, #tpu.memory_space<vmem>>, %arg4: memref<128x128xbf16, #tpu.memory_space<vmem>>, %arg5: memref<1x128xf32, #tpu.memory_space<vmem>>, %arg6: memref<128x16xbf16, #tpu.memory_space<vmem>>, %arg7: memref<1x16xf32, #tpu.memory_space<vmem>>, %arg8: memref<8x16xf32, #tpu.memory_space<vmem>>) attributes {dimension_semantics = [#tpu.dimension_semantics<parallel>], iteration_bounds = array<i64: 1>, scalar_prefetch = 0 : i64, scratch_operands = 0 : i64, tpu.core_type = #tpu.core_type<tc>, window_params = [{transform_indices = @transform_0, window_bounds = array<i64: 8, 32>}, {pipeline_mode = #tpu.pipeline_mode<synchronous>, transform_indices = @transform_1, window_bounds = array<i64: 32, 128>}, {pipeline_mode = #tpu.pipeline_mode<synchronous>, transform_indices = @transform_2, window_bounds = array<i64: 1, 128>}, {pipeline_mode = #tpu.pipeline_mode<synchronous>, transform_indices = @transform_3, window_bounds = array<i64: 128, 128>}, {pipeline_mode = #tpu.pipeline_mode<synchronous>, transform_indices = @transform_4, window_bounds = array<i64: 1, 128>}, {pipeline_mode = #tpu.pipeline_mode<synchronous>, transform_indices = @transform_5, window_bounds = array<i64: 128, 16>}, {pipeline_mode = #tpu.pipeline_mode<synchronous>, transform_indices = @transform_6, window_bounds = array<i64: 1, 16>}, {transform_indices = @transform_7, window_bounds = array<i64: 8, 16>}]} {
    %c0 = arith.constant 0 : index
    %c0_0 = arith.constant 0 : index
    %0 = vector.load %arg1[%c0, %c0_0] : memref<8x32xbf16, #tpu.memory_space<vmem>>, vector<8x32xbf16>
    %c0_1 = arith.constant 0 : index
    %c0_2 = arith.constant 0 : index
    %1 = vector.load %arg2[%c0_1, %c0_2] : memref<32x128xbf16, #tpu.memory_space<vmem>>, vector<32x128xbf16>
    %cst = arith.constant dense<0.000000e+00> : vector<8x128xf32>
    %2 = tpu.matmul %0, %1, %cst {dimension_numbers = #tpu.dot_dimension_numbers<[1], [0], [0], [1], [0, 0, 1, 1], [], []>} : vector<8x32xbf16>, vector<32x128xbf16>, vector<8x128xf32> -> vector<8x128xf32>
    %c0_3 = arith.constant 0 : index
    %c0_4 = arith.constant 0 : index
    %3 = vector.load %arg3[%c0_3, %c0_4] : memref<1x128xf32, #tpu.memory_space<vmem>>, vector<1x128xf32>
    %4 = vector.broadcast %3 : vector<1x128xf32> to vector<8x128xf32>
    %5 = arith.addf %2, %4 : vector<8x128xf32>
    %cst_5 = arith.constant 0.000000e+00 : f32
    %6 = vector.broadcast %cst_5 : f32 to vector<8x128xf32>
    %7 = arith.maximumf %5, %6 : vector<8x128xf32>
    %8 = arith.truncf %7 : vector<8x128xf32> to vector<8x128xbf16>
    %c0_6 = arith.constant 0 : index
    %c0_7 = arith.constant 0 : index
    %9 = vector.load %arg4[%c0_6, %c0_7] : memref<128x128xbf16, #tpu.memory_space<vmem>>, vector<128x128xbf16>
    %cst_8 = arith.constant dense<0.000000e+00> : vector<8x128xf32>
    %10 = tpu.matmul %8, %9, %cst_8 {dimension_numbers = #tpu.dot_dimension_numbers<[1], [0], [0], [1], [0, 0, 1, 1], [], []>} : vector<8x128xbf16>, vector<128x128xbf16>, vector<8x128xf32> -> vector<8x128xf32>
    %c0_9 = arith.constant 0 : index
    %c0_10 = arith.constant 0 : index
    %11 = vector.load %arg5[%c0_9, %c0_10] : memref<1x128xf32, #tpu.memory_space<vmem>>, vector<1x128xf32>
    %12 = vector.broadcast %11 : vector<1x128xf32> to vector<8x128xf32>
    %13 = arith.addf %10, %12 : vector<8x128xf32>
    %cst_11 = arith.constant 0.000000e+00 : f32
    %14 = vector.broadcast %cst_11 : f32 to vector<8x128xf32>
    %15 = arith.maximumf %13, %14 : vector<8x128xf32>
    %16 = arith.truncf %15 : vector<8x128xf32> to vector<8x128xbf16>
    %c0_12 = arith.constant 0 : index
    %c0_13 = arith.constant 0 : index
    %17 = vector.load %arg6[%c0_12, %c0_13] : memref<128x16xbf16, #tpu.memory_space<vmem>>, vector<128x16xbf16>
    %cst_14 = arith.constant dense<0.000000e+00> : vector<8x16xf32>
    %18 = tpu.matmul %16, %17, %cst_14 {dimension_numbers = #tpu.dot_dimension_numbers<[1], [0], [0], [1], [0, 0, 1, 1], [], []>} : vector<8x128xbf16>, vector<128x16xbf16>, vector<8x16xf32> -> vector<8x16xf32>
    %c0_15 = arith.constant 0 : index
    %c0_16 = arith.constant 0 : index
    %19 = vector.load %arg7[%c0_15, %c0_16] : memref<1x16xf32, #tpu.memory_space<vmem>>, vector<1x16xf32>
    %20 = vector.broadcast %19 : vector<1x16xf32> to vector<8x16xf32>
    %21 = arith.addf %18, %20 : vector<8x16xf32>
    %22 = math.tanh %21 : vector<8x16xf32>
    %c0_17 = arith.constant 0 : index
    %c0_18 = arith.constant 0 : index
    %23 = vector.load %arg8[%c0_17, %c0_18] : memref<8x16xf32, #tpu.memory_space<vmem>>, vector<8x16xf32>
    tpu.vector_store %arg8[%c0_17, %c0_18], %22 {strides = array<i32>} : memref<8x16xf32, #tpu.memory_space<vmem>>, vector<8x16xf32>,
    return
  }
  func.func @transform_0(%arg0: i32) -> (i32, i32) {
    %c0_i32 = arith.constant 0 : i32
    %c0_i32_0 = arith.constant 0 : i32
    return %arg0, %c0_i32 : i32, i32
  }
  func.func @transform_1(%arg0: i32) -> (i32, i32) {
    %c0_i32 = arith.constant 0 : i32
    %c0_i32_0 = arith.constant 0 : i32
    %c0_i32_1 = arith.constant 0 : i32
    return %c0_i32, %c0_i32_0 : i32, i32
  }
  func.func @transform_2(%arg0: i32) -> (i32, i32) {
    %c0_i32 = arith.constant 0 : i32
    %c0_i32_0 = arith.constant 0 : i32
    %c0_i32_1 = arith.constant 0 : i32
    return %c0_i32, %c0_i32_0 : i32, i32
  }
  func.func @transform_3(%arg0: i32) -> (i32, i32) {
    %c0_i32 = arith.constant 0 : i32
    %c0_i32_0 = arith.constant 0 : i32
    %c0_i32_1 = arith.constant 0 : i32
    return %c0_i32, %c0_i32_0 : i32, i32
  }
  func.func @transform_4(%arg0: i32) -> (i32, i32) {
    %c0_i32 = arith.constant 0 : i32
    %c0_i32_0 = arith.constant 0 : i32
    %c0_i32_1 = arith.constant 0 : i32
    return %c0_i32, %c0_i32_0 : i32, i32
  }
  func.func @transform_5(%arg0: i32) -> (i32, i32) {
    %c0_i32 = arith.constant 0 : i32
    %c0_i32_0 = arith.constant 0 : i32
    %c0_i32_1 = arith.constant 0 : i32
    return %c0_i32, %c0_i32_0 : i32, i32
  }
  func.func @transform_6(%arg0: i32) -> (i32, i32) {
    %c0_i32 = arith.constant 0 : i32
    %c0_i32_0 = arith.constant 0 : i32
    %c0_i32_1 = arith.constant 0 : i32
    return %c0_i32, %c0_i32_0 : i32, i32
  }
  func.func @transform_7(%arg0: i32) -> (i32, i32) {
    %c0_i32 = arith.constant 0 : i32
    %c0_i32_0 = arith.constant 0 : i32
    return %arg0, %c0_i32 : i32, i32
  }
}

</mosaic_0001>

<bundles_post_ra>
// kernel: tpu_custom_call.1
= control target key start
LH: loop header
LB: loop body
LE: loop exit
PB: predicated region body
PF: predicated region fallthrough
CT: control target
= control target key end

     0   :  { %12 = vsyncpa [#allocation3], 0  ;;  %s670_s0 = inlined_call_operand.hbm [shape: bf16[8,32], index: 0, kind: input, shape index: {}]   ;;  %s671_s1 = inlined_call_operand.vmem [shape: bf16[32,128], index: 1, kind: input, shape index: {}]   ;;  %s672_s2 = inlined_call_operand.vmem [shape: f32[1,128], index: 2, kind: input, shape index: {}]   ;;  %s673_s3 = inlined_call_operand.vmem [shape: bf16[128,128], index: 3, kind: input, shape index: {}]   ;;  %s674_s4 = inlined_call_operand.vmem [shape: f32[1,128], index: 4, kind: input, shape index: {}]   ;;  %s675_s5 = inlined_call_operand.vmem [shape: bf16[128,16], index: 5, kind: input, shape index: {}]   ;;  %s676_s6 = inlined_call_operand.vmem [shape: f32[1,16], index: 6, kind: input, shape index: {}]   ;;  %s677_s7 = inlined_call_operand.hbm [shape: f32[8,16], index: 7, kind: output, shape index: {}]  }
   0x1   :  { %13 = vsyncpa [#allocation4], 0  ;;  %s515_s24 = smov [#allocation2]   ;;  %s467_s28 = scalar_lea.hbm %s670_s0, 64 }
   0x2   :  { %s20_s25 = sshll.u32 %s515_s24, 4  ;;  %p468_p0 = scmp.ne.s32.totalorder %s670_s0, %s467_s28  ;;  %s21_s25 = int_to_ptr.vmem [resolvable:$true] %s20_s25 }
   0x3   :  { %p471_p1 = scmp.lt.u32.totalorder %s467_s28, %s670_s0 }
   0x5   :  { %p473_p2 = pnand %p471_p1, %p468_p0 }
   0x7   :  { %476 = shalt.err (!%p473_p2)
}
   0x8   :  { %s477_s10 = scalar_lea.vmem %s21_s25, 64  ;;  %p482_p4 = scmp.lt.s32.totalorder %s21_s25, %s21_s25 }
   0x9   :  { %p478_p3 = scmp.ne.s32.totalorder %s21_s25, %s477_s10  ;;  %p483_p5 = scmp.lt.s32.totalorder %s477_s10, %s477_s10 }
   0xb   :  { %p484_p6 = por %p483_p5, %p482_p4 }
   0xd   :  { %p485_p7 = pnand %p484_p6, %p478_p3 }
   0xf   :  { %488 = shalt.err (!%p485_p7)
}
  0x10   :  { %23 = dma.hbm_to_vmem [thread:$0]  %s670_s0, 64, %s21_s25, [#allocation3]  }
  0x11   :  { %511 = dma.done.wait [#allocation3], 64  }
  0x12   :  { %512 = vsyncadd [#allocation3], 4294967232  ;;  %v516_v0 = vmov 0.0   ;;  %vm517_vm0 = vmmov 0   ;;  %v447_v1 = vld [vmem:[%s671_s1] sm:$0xff]   ;;  %v448_v2 = vld [vmem:[%s671_s1 + $0x8] sm:$0xff]  }
  0x13   :  { %395 = vmatprep.subr.bf16.mxu0 %v516_v0  ;;  %399 = vmatprep.mubr.msk.bf16.mxu0 %vm517_vm0, %v516_v0  ;;  %v449_v3 = vld [vmem:[%s673_s3] sm:$0xff]   ;;  %vm64_vm1 = vcmask 261120   ;;  %v450_v4 = vld [vmem:[%s673_s3 + $0x8] sm:$0xff]   ;;  %v451_v6 = vld [vmem:[%s673_s3 + $0x10] sm:$0xff]   ;;  %vm335_vm2 = vcmask 130048  }
  0x14   :  { %403 = vmatprep.subr.bf16.mxu1 %v516_v0  ;;  %419 = vmatprep.mubr.msk.bf16.mxu1 %vm517_vm0, %v516_v0  ;;  %v40_v5 = vld [vmem:[#allocation2] sm:$0xf]  ;;  %v452_v7 = vld [vmem:[%s673_s3 + $0x18] sm:$0xff]   ;;  %v454_v9 = vld [vmem:[%s673_s3 + $0x28] sm:$0xff]  }
  0x15   :  { %396 = vmatpush3.bf16.msra.mxu0 %v447_v1  ;;  %404 = vmatpush3.bf16.msra.mxu1 %v449_v3  ;;  %v453_v8 = vld [vmem:[%s673_s3 + $0x20] sm:$0xff]   ;;  %v455_v10 = vld [vmem:[%s673_s3 + $0x30] sm:$0xff]   ;;  %v456_v11 = vld [vmem:[%s673_s3 + $0x38] sm:$0xff]  }
  0x16   :  { %397 = vmatprep.subr.bf16.mxu0 %v516_v0  ;;  %405 = vmatprep.subr.bf16.mxu1 %v516_v0  ;;  %v457_v12 = vld [vmem:[%s675_s5] sm:$0xff]   ;;  %v458_v13 = vld [vmem:[%s675_s5 + $0x8] sm:$0xff]   ;;  %v459_v14 = vld [vmem:[%s675_s5 + $0x10] sm:$0xff]  }
  0x17   :  { %v460_v15 = vld [vmem:[%s675_s5 + $0x18] sm:$0xff]   ;;  %v461_v16 = vld [vmem:[%s675_s5 + $0x20] sm:$0xff]   ;;  %v462_v17 = vld [vmem:[%s675_s5 + $0x28] sm:$0xff]  }
  0x18   :  { %v352_v18 = vld [vmem:[%s672_s2] ss:$0 sm:$0xff]  ;;  %v463_v26 = vld [vmem:[%s675_s5 + $0x30] sm:$0xff]   ;;  %v464_v27 = vld [vmem:[%s675_s5 + $0x38] sm:$0xff]   ;;  %s518_s5 = smov [#allocation5]  }
  0x19   :  { %398 = vmatpush3.bf16.msra.mxu0 %v448_v2  ;;  %406 = vmatpush3.bf16.msra.mxu1 %v450_v4  ;;  %v356_v28 = vld [vmem:[%s674_s4] ss:$0 sm:$0xff]  ;;  %s343_s4 = sshll.u32 %s518_s5, 4  ;;  %s344_s4 = int_to_ptr.vmem [resolvable:$true] %s343_s4 }
  0x1a   :  { %423 = vmatprep.subr.bf16.mxu0 %v516_v0  ;;  %407 = vmatprep.subr.bf16.mxu1 %v516_v0  ;;  %v365_v36 = vld [vmem:[%s676_s6] ss:$0 sm:$0xff]  ;;  %s489_s26 = scalar_lea.vmem %s344_s4, 128  ;;  %p494_p9 = scmp.lt.s32.totalorder %s344_s4, %s344_s4 }
  0x1b   :  { %p490_p8 = scmp.ne.s32.totalorder %s344_s4, %s489_s26  ;;  %p495_p10 = scmp.lt.s32.totalorder %s489_s26, %s489_s26 }
  0x1c   :  { %400 = vmatmul.mubr.msk.bf16.vlgmr.msra.gmra.mrb[0].mxu0 %vm64_vm1, %v40_v5 }
  0x1d   :  { %439 = vmatprep.mubr.msk.bf16.mxu0 %vm517_vm0, %v516_v0  ;;  %408 = vmatpush3.bf16.msra.mxu1 %v451_v6  ;;  %p496_p11 = por %p495_p10, %p494_p9 }
  0x1e   :  { %409 = vmatprep.subr.bf16.mxu1 %v516_v0  ;;  %424 = vmatpush3.bf16.msra.mxu0 %v457_v12 }
  0x1f   :  { %425 = vmatprep.subr.bf16.mxu0 %v516_v0  ;;  %p497_p12 = pnand %p496_p11, %p490_p8 }
  0x21   :  { %410 = vmatpush3.bf16.msra.mxu1 %v452_v7 }
  0x22   :  { %411 = vmatprep.subr.bf16.mxu1 %v516_v0  ;;  %426 = vmatpush3.bf16.msra.mxu0 %v458_v13 }
  0x23   :  { %427 = vmatprep.subr.bf16.mxu0 %v516_v0 }
  0x25   :  { %412 = vmatpush3.bf16.msra.mxu1 %v453_v8 }
  0x26   :  { %413 = vmatprep.subr.bf16.mxu1 %v516_v0  ;;  %428 = vmatpush3.bf16.msra.mxu0 %v459_v14 }
  0x27   :  { %429 = vmatprep.subr.bf16.mxu0 %v516_v0 }
  0x29   :  { %414 = vmatpush3.bf16.msra.mxu1 %v454_v9 }
  0x2a   :  { %415 = vmatprep.subr.bf16.mxu1 %v516_v0  ;;  %430 = vmatpush3.bf16.msra.mxu0 %v460_v15 }
  0x2b   :  { %431 = vmatprep.subr.bf16.mxu0 %v516_v0 }
  0x2d   :  { %416 = vmatpush3.bf16.msra.mxu1 %v455_v10 }
  0x2e   :  { %417 = vmatprep.subr.bf16.mxu1 %v516_v0  ;;  %432 = vmatpush3.bf16.msra.mxu0 %v461_v16 }
  0x2f   :  { %433 = vmatprep.subr.bf16.mxu0 %v516_v0 }
  0x31   :  { %418 = vmatpush3.bf16.msra.mxu1 %v456_v11 }
  0x32   :  { %434 = vmatpush3.bf16.msra.mxu0 %v462_v17 }
  0x33   :  { %435 = vmatprep.subr.bf16.mxu0 %v516_v0 }
  0x36   :  { %436 = vmatpush3.bf16.msra.mxu0 %v463_v26 }
  0x37   :  { %437 = vmatprep.subr.bf16.mxu0 %v516_v0 }
  0x3a   :  { %438 = vmatpush3.bf16.msra.mxu0 %v464_v27 }
  0xef   :  { %v102_v19 = vpop.f32.mrb[0].mxu0 }
  0xf0   :  { %v103_v20 = vadd.f32 %v352_v18, %v102_v19  ;;  %v401_v21 = vpop.f32.mrb[1].mxu0 }
  0xf1   :  { %v105_v22 = vpop.f32.mrb[2].mxu0 }
  0xf2   :  { %v108_v23 = vmax.f32 %v103_v20, 0.0  ;;  %v402_v24 = vpop.f32.mrb[3].mxu0 }
  0xf4   :  { %v109_v25 = vpack.c.bf16 %v108_v23, %v108_v23 }
  0xf6   :  { %420 = vmatmul.mubr.bf16.vlgmr.msra.gmra.mrb[0].mxu1 %v109_v25 }
 0x1c9   :  { %v215_v29 = vpop.f32.mrb[0].mxu1 }
 0x1ca   :  { %v216_v30 = vadd.f32 %v356_v28, %v215_v29  ;;  %v421_v31 = vpop.f32.mrb[1].mxu1 }
 0x1cb   :  { %v218_v32 = vpop.f32.mrb[2].mxu1 }
 0x1cc   :  { %v221_v33 = vmax.f32 %v216_v30, 0.0  ;;  %v422_v34 = vpop.f32.mrb[3].mxu1 }
 0x1ce   :  { %v222_v35 = vpack.c.bf16 %v221_v33, %v221_v33 }
 0x1d0   :  { %440 = vmatmul.mubr.bf16.vlgmr.msra.gmra.mrb[4].mxu0 %v222_v35 }
 0x2a3   :  { %v328_v37 = vpop.f32.mrb[4].mxu0 }
 0x2a4   :  { %v329_v38 = vadd.f32 %v365_v36, %v328_v37  ;;  %v441_v39 = vpop.f32.mrb[5].mxu0 }
 0x2a5   :  { %v331_v40 = vpop.f32.mrb[6].mxu0 }
 0x2a6   :  { %465 = vtanh.f32 %v329_v38  ;;  %v442_v41 = vpop.f32.mrb[7].mxu0 }
 0x2b0   :  { %v466_v42 = vpop.eup %465 }
 0x2b1   :  { %336 = vst.msk [vmem:[#allocation5] sm:$0xff] %vm335_vm2, %v466_v42 }
 0x2b2   :  { %500 = shalt.err (!%p497_p12)
}
 0x2b3   :  { %s501_s28 = scalar_lea.hbm %s677_s7, 128 }
 0x2b4   :  { %p502_p13 = scmp.ne.s32.totalorder %s677_s7, %s501_s28  ;;  %p505_p0 = scmp.lt.u32.totalorder %s501_s28, %s677_s7 }
 0x2b6   :  { %p507_p1 = pnand %p505_p0, %p502_p13 }
 0x2b8   :  { %510 = shalt.err (!%p507_p1)
}
 0x2b9   :  { %346 = dma.vmem_to_hbm [thread:$0]  %s344_s4, 128, %s677_s7, [#allocation4]  }
 0x2ba   :  { %513 = dma.done.wait [#allocation4], 128  }
 0x2bb   :  { %514 = vsyncadd [#allocation4], 4294967168 }
 0x2bc   :  { %350 = vsyncpa [#allocation3], 1 }
 0x2bd   :  { %351 = vsyncpa [#allocation4], 1 }

</bundles_post_ra>
